<compile_context>
chip_gen: v5e
topology: v5e:2x2
jax: 0.10.0
libtpu: 0.0.40
codegen_flags: <defaults>
</compile_context>

<pallas_src>
from functools import partial

import jax
import jax.numpy as jnp
from jax.experimental import pallas as pl
from jax.experimental.pallas import tpu as pltpu

_LANES = 512            # lane-dense slab width (multiple of 128 -> unmasked vst)
_MAX_BLOCK_ROWS = 512   # 512 x 512 x 4B = 1 MiB per f32 block


def _round_up(a, b):
    return -(-a // b) * b


def _fake_quant(v, quant_max):
    # deterministic synthetic fake-quantizer (see note above)
    return jnp.clip(jnp.round(v), -quant_max, quant_max)


def _fq_amax_kernel(scales_ref, x_ref, y_ref, amax_ref, acc_ref, *,
                    quant_max, apply_scale):
    """One grid step: fake-quantize a (tm, _LANES) tile, fold |.| into a VMEM accumulator."""
    j = pl.program_id(1)

    x = x_ref[...].astype(jnp.float32)
    if apply_scale:
        sf = scales_ref[0]       # SMEM scalars
        inv_sf = scales_ref[1]   # exact 1/sf (sf is a power of two)
        q = _fake_quant(x * sf, quant_max) * inv_sf
    else:
        # per-channel branch: sf == 1, skip the two per-element muls entirely
        q = _fake_quant(x, quant_max)
    y = q.astype(y_ref.dtype)
    y_ref[...] = y

    # observe the quantized output (matches torch: amax of |x_out|)
    a = jnp.abs(y.astype(jnp.float32))

    @pl.when(j == 0)
    def _():
        acc_ref[...] = a                              # init accumulator (per core)

    @pl.when(j > 0)
    def _():
        acc_ref[...] = jnp.maximum(acc_ref[...], a)   # pure VPU elementwise max

    @pl.when(j == pl.num_programs(1) - 1)
    def _():
        # single cross-sublane reduce per core, then one lane-dense store
        part = jnp.max(acc_ref[...], axis=0, keepdims=True)       # (1, _LANES)
        amax_ref[...] = jnp.broadcast_to(part, amax_ref.shape)    # (8, _LANES)


def fused_amax_obs_fake_quantize(x, amax_history, *, quant_max=256.0,
                                 is_per_tensor=False):
    """Functional equivalent of FusedAmaxObsFakeQuantize.forward.

    Returns (x_fake_quantized, new_amax_history).
    """
    if x.size == 0:
        return x, amax_history

    # --- scale factor from history (tiny glue, matches per-tensor branch) ---
    if is_per_tensor:
        amax_h = jnp.max(amax_history).astype(jnp.float32)
        exp = jnp.floor(jnp.log2(jnp.float32(quant_max) / amax_h))
        sf = jnp.power(jnp.float32(2.0), jnp.maximum(exp, jnp.float32(0.0)))
        sf = jnp.where(amax_h > 0.0, sf, jnp.float32(1.0))
        sf = jnp.where(jnp.isfinite(amax_h), sf, jnp.float32(1.0))
    else:
        sf = jnp.float32(1.0)                 # fake_quant(x * 1) * 1 == fake_quant(x)
    inv_sf = jnp.float32(1.0) / sf            # exact: sf is a power of two
    scales = jnp.stack([sf, inv_sf]).astype(jnp.float32)   # (2,) SMEM scalars

    # --- flatten to a lane-dense 2D slab; skip pad when already aligned ---
    orig_shape = x.shape
    n = x.size
    rows_raw = -(-n // _LANES)

    if rows_raw <= _MAX_BLOCK_ROWS:
        # one block covers everything (block == full array dims)
        ncores, chunks, tm = 1, 1, rows_raw
        rows = rows_raw
    else:
        # 1 MiB blocks, split across 2 cores on v7x (sequential no-op on v5e/v6e)
        ncores, tm = 2, _MAX_BLOCK_ROWS
        rows = _round_up(rows_raw, tm * ncores)
        chunks = rows // (tm * ncores)

    pad = rows * _LANES - n
    xf = x.reshape(-1)
    if pad:
        # zero padding is amax-safe (|fake_quant(0)| == 0) and sliced off below
        # TODO(synk): mask the ragged tail in-kernel to avoid this extra HBM pass
        xf = jnp.pad(xf, (0, pad))
    xf = xf.reshape(rows, _LANES)

    kernel = partial(_fq_amax_kernel, quant_max=float(quant_max),
                     apply_scale=bool(is_per_tensor))

    y_flat, amax_part = pl.pallas_call(
        kernel,
        out_shape=(
            jax.ShapeDtypeStruct((rows, _LANES), x.dtype),
            jax.ShapeDtypeStruct((ncores * 8, _LANES), jnp.float32),
        ),
        grid=(ncores, chunks),
        in_specs=[
            pl.BlockSpec(memory_space=pltpu.MemorySpace.SMEM),               # scales
            pl.BlockSpec((tm, _LANES), lambda c, j: (c * chunks + j, 0)),    # x tile
        ],
        out_specs=(
            pl.BlockSpec((tm, _LANES), lambda c, j: (c * chunks + j, 0)),    # y tile
            pl.BlockSpec((8, _LANES), lambda c, j: (c, 0)),                  # per-core amax
        ),
        scratch_shapes=[pltpu.VMEM((tm, _LANES), jnp.float32)],              # |y| accumulator
        compiler_params=pltpu.CompilerParams(
            dimension_semantics=("parallel", "arbitrary")),
    )(scales, xf)

    if pad:
        y = y_flat.reshape(-1)[:n].reshape(orig_shape)
    else:
        y = y_flat.reshape(orig_shape)       # metadata-only reshape

    amax = jnp.max(amax_part)

    # --- history update: roll(-1) then overwrite slot 0 (exact torch semantics) ---
    new_history = jnp.roll(amax_history, -1, axis=0).at[0].set(
        amax.astype(amax_history.dtype))
    return y, new_history


def _reference(x, amax_history, *, quant_max=256.0, is_per_tensor=False):
    """Pure-JAX reference mirroring the PyTorch forward."""
    if is_per_tensor:
        amax = jnp.max(amax_history).astype(jnp.float32)
        exp = jnp.floor(jnp.log2(jnp.float32(quant_max) / amax))
        sf = jnp.power(jnp.float32(2.0), jnp.maximum(exp, jnp.float32(0.0)))
        sf = jnp.where(amax > 0.0, sf, 1.0)
        sf = jnp.where(jnp.isfinite(amax), sf, 1.0)
        y = _fake_quant(x * sf, quant_max) / sf
    else:
        y = _fake_quant(x, quant_max)
    new_hist = jnp.roll(amax_history, -1, axis=0).at[0].set(jnp.max(jnp.abs(y)))
    return y, new_hist


if __name__ == "__main__":
    key = jax.random.PRNGKey(0)
    # NCHW input, small shapes: batch=2, channels=4, spatial=16x16
    x = jax.random.normal(key, (2, 4, 16, 16), dtype=jnp.float32) * 3.0

    # module __init__: amax_history_len=5, zero-initialized buffer
    amax_history = jnp.zeros((5,), dtype=jnp.float32)

    # call 1 (history all-zero -> sf=1 path), call 2 (non-trivial sf), per-tensor mode
    y1, h1 = fused_amax_obs_fake_quantize(x, amax_history,
                                          quant_max=256.0, is_per_tensor=True)
    y2, h2 = fused_amax_obs_fake_quantize(x, h1,
                                          quant_max=256.0, is_per_tensor=True)
    # also the default per-channel (is_per_tensor=False) branch
    y3, h3 = fused_amax_obs_fake_quantize(x, amax_history,
                                          quant_max=256.0, is_per_tensor=False)
    jax.block_until_ready((y1, h1, y2, h2, y3, h3))

    # correctness vs pure-JAX reference
    r1, rh1 = _reference(x, amax_history, quant_max=256.0, is_per_tensor=True)
    r2, rh2 = _reference(x, rh1, quant_max=256.0, is_per_tensor=True)
    r3, rh3 = _reference(x, amax_history, quant_max=256.0, is_per_tensor=False)

    assert jnp.allclose(y1, r1, atol=1e-6), "call-1 output mismatch"
    assert jnp.allclose(h1, rh1, atol=1e-6), "call-1 history mismatch"
    assert jnp.allclose(y2, r2, atol=1e-6), "call-2 output mismatch"
    assert jnp.allclose(h2, rh2, atol=1e-6), "call-2 history mismatch"
    assert jnp.allclose(y3, r3, atol=1e-6), "per-channel output mismatch"
    assert jnp.allclose(h3, rh3, atol=1e-6), "per-channel history mismatch"

    print("KERNEL_OK")
</pallas_src>

<mosaic_0001>
module attributes {stable_mosaic.version = 11 : i64} {
  func.func @_fq_amax_kernel(%arg0: i32, %arg1: i32, %arg2: memref<2xf32, #tpu.memory_space<smem>>, %arg3: memref<4x512xf32, #tpu.memory_space<vmem>>, %arg4: memref<4x512xf32, #tpu.memory_space<vmem>>, %arg5: memref<8x512xf32, #tpu.memory_space<vmem>>, %arg6: memref<4x512xf32, #tpu.memory_space<vmem>>) attributes {dimension_semantics = [#tpu.dimension_semantics<parallel>, #tpu.dimension_semantics<arbitrary>], iteration_bounds = array<i64: 1, 1>, scalar_prefetch = 0 : i64, scratch_operands = 1 : i64, tpu.core_type = #tpu.core_type<tc>, window_params = [{transform_indices = @transform_0, window_bounds = array<i64: 2>}, {transform_indices = @transform_1, window_bounds = array<i64: 4, 512>}, {transform_indices = @transform_2, window_bounds = array<i64: 4, 512>}, {transform_indices = @transform_3, window_bounds = array<i64: 8, 512>}]} {
    %c0 = arith.constant 0 : index
    %c0_0 = arith.constant 0 : index
    %0 = vector.load %arg3[%c0, %c0_0] : memref<4x512xf32, #tpu.memory_space<vmem>>, vector<4x512xf32>
    %c0_1 = arith.constant 0 : index
    %1 = memref.load %arg2[%c0_1] : memref<2xf32, #tpu.memory_space<smem>>
    %c1 = arith.constant 1 : index
    %2 = memref.load %arg2[%c1] : memref<2xf32, #tpu.memory_space<smem>>
    %3 = vector.broadcast %1 : f32 to vector<4x512xf32>
    %4 = arith.mulf %0, %3 : vector<4x512xf32>
    %5 = math.roundeven %4 : vector<4x512xf32>
    %cst = arith.constant -2.560000e+02 : f32
    %cst_2 = arith.constant 2.560000e+02 : f32
    %6 = vector.broadcast %cst : f32 to vector<4x512xf32>
    %7 = arith.maximumf %6, %5 : vector<4x512xf32>
    %8 = vector.broadcast %cst_2 : f32 to vector<4x512xf32>
    %9 = arith.minimumf %8, %7 : vector<4x512xf32>
    %10 = vector.broadcast %2 : f32 to vector<4x512xf32>
    %11 = arith.mulf %9, %10 : vector<4x512xf32>
    %c0_3 = arith.constant 0 : index
    %c0_4 = arith.constant 0 : index
    %12 = vector.load %arg4[%c0_3, %c0_4] : memref<4x512xf32, #tpu.memory_space<vmem>>, vector<4x512xf32>
    tpu.vector_store %arg4[%c0_3, %c0_4], %11 {strides = array<i32>} : memref<4x512xf32, #tpu.memory_space<vmem>>, vector<4x512xf32>,
    %13 = math.absf %11 : vector<4x512xf32>
    %c0_i32 = arith.constant 0 : i32
    %14 = arith.cmpi eq, %arg1, %c0_i32 : i32
    %15 = arith.extui %14 : i1 to i32
    %c0_i32_5 = arith.constant 0 : i32
    %16 = arith.cmpi ne, %15, %c0_i32_5 : i32
    scf.if %16 {
      %c0_10 = arith.constant 0 : index
      %c0_11 = arith.constant 0 : index
      %23 = vector.load %arg6[%c0_10, %c0_11] : memref<4x512xf32, #tpu.memory_space<vmem>>, vector<4x512xf32>
      tpu.vector_store %arg6[%c0_10, %c0_11], %13 {strides = array<i32>} : memref<4x512xf32, #tpu.memory_space<vmem>>, vector<4x512xf32>,
    } else {
    }
    %c0_i32_6 = arith.constant 0 : i32
    %17 = arith.cmpi sgt, %arg1, %c0_i32_6 : i32
    %18 = arith.extui %17 : i1 to i32
    %c0_i32_7 = arith.constant 0 : i32
    %19 = arith.cmpi ne, %18, %c0_i32_7 : i32
    scf.if %19 {
      %c0_10 = arith.constant 0 : index
      %c0_11 = arith.constant 0 : index
      %23 = vector.load %arg6[%c0_10, %c0_11] : memref<4x512xf32, #tpu.memory_space<vmem>>, vector<4x512xf32>
      %24 = arith.maximumf %23, %13 : vector<4x512xf32>
      %c0_12 = arith.constant 0 : index
      %c0_13 = arith.constant 0 : index
      %25 = vector.load %arg6[%c0_12, %c0_13] : memref<4x512xf32, #tpu.memory_space<vmem>>, vector<4x512xf32>
      tpu.vector_store %arg6[%c0_12, %c0_13], %24 {strides = array<i32>} : memref<4x512xf32, #tpu.memory_space<vmem>>, vector<4x512xf32>,
    } else {
    }
    %c0_i32_8 = arith.constant 0 : i32
    %20 = arith.cmpi eq, %arg1, %c0_i32_8 : i32
    %21 = arith.extui %20 : i1 to i32
    %c0_i32_9 = arith.constant 0 : i32
    %22 = arith.cmpi ne, %21, %c0_i32_9 : i32
    scf.if %22 {
      %c0_10 = arith.constant 0 : index
      %c0_11 = arith.constant 0 : index
      %23 = vector.load %arg6[%c0_10, %c0_11] : memref<4x512xf32, #tpu.memory_space<vmem>>, vector<4x512xf32>
      %cst_12 = arith.constant dense<0xFF800000> : vector<512xf32>
      %24 = vector.multi_reduction <maximumf>, %23, %cst_12 [0] : vector<4x512xf32> to vector<512xf32>
      %25 = vector.shape_cast %24 : vector<512xf32> to vector<1x512xf32>
      %26 = vector.shape_cast %25 : vector<1x512xf32> to vector<1x512xf32>
      %27 = vector.broadcast %26 : vector<1x512xf32> to vector<8x512xf32>
      %c0_13 = arith.constant 0 : index
      %c0_14 = arith.constant 0 : index
      %28 = vector.load %arg5[%c0_13, %c0_14] : memref<8x512xf32, #tpu.memory_space<vmem>>, vector<8x512xf32>
      tpu.vector_store %arg5[%c0_13, %c0_14], %27 {strides = array<i32>} : memref<8x512xf32, #tpu.memory_space<vmem>>, vector<8x512xf32>,
    } else {
    }
    return
  }
  func.func @transform_0(%arg0: i32, %arg1: i32) -> i32 {
    %c0_i32 = arith.constant 0 : i32
    %c0_i32_0 = arith.constant 0 : i32
    return %c0_i32 : i32
  }
  func.func @transform_1(%arg0: i32, %arg1: i32) -> (i32, i32) {
    %c1_i32 = arith.constant 1 : i32
    %0 = arith.muli %arg0, %c1_i32 : i32
    %1 = arith.addi %0, %arg1 : i32
    %c0_i32 = arith.constant 0 : i32
    %c0_i32_0 = arith.constant 0 : i32
    return %1, %c0_i32 : i32, i32
  }
  func.func @transform_2(%arg0: i32, %arg1: i32) -> (i32, i32) {
    %c1_i32 = arith.constant 1 : i32
    %0 = arith.muli %arg0, %c1_i32 : i32
    %1 = arith.addi %0, %arg1 : i32
    %c0_i32 = arith.constant 0 : i32
    %c0_i32_0 = arith.constant 0 : i32
    return %1, %c0_i32 : i32, i32
  }
  func.func @transform_3(%arg0: i32, %arg1: i32) -> (i32, i32) {
    %c0_i32 = arith.constant 0 : i32
    %c0_i32_0 = arith.constant 0 : i32
    return %arg0, %c0_i32 : i32, i32
  }
}

</mosaic_0001>

<bundles_post_ra>
// kernel: tpu_custom_call.1
= control target key start
LH: loop header
LB: loop body
LE: loop exit
PB: predicated region body
PF: predicated region fallthrough
CT: control target
= control target key end

     0   :  { %9 = vsyncpa [#allocation6], 0  ;;  %s324_s0 = inlined_call_operand.hbm [shape: f32[2], index: 0, kind: input, shape index: {}]   ;;  %s325_s1 = inlined_call_operand.hbm [shape: f32[4,512], index: 1, kind: input, shape index: {}]   ;;  %s326_s2 = inlined_call_operand.hbm [shape: f32[4,512], index: 2, kind: output, shape index: {0}]   ;;  %s327_s3 = inlined_call_operand.hbm [shape: f32[8,512], index: 3, kind: output, shape index: {1}]  }
   0x1   :  { %10 = vsyncpa [#allocation4], 0 }
   0x2   :  { %11 = vsyncpa [#allocation5], 0 }
   0x3   :  { %12 = vsyncpa [#allocation10], 0  ;;  %s18_s14 = sshll.u32 %s324_s0, 4  ;;  %s31_s17 = sshll.u32 %s325_s1, 4  ;;  %s19_s14 = int_to_ptr.hbm [resolvable:$true] %s18_s14  ;;  %s32_s17 = int_to_ptr.hbm [resolvable:$true] %s31_s17 }
   0x4   :  { %s288_s18 = smov [#allocation3]   ;;  %s289_s19 = smov [#allocation7]  }
   0x5   :  { %21 = dma.hbm_to_smem %s19_s14, 16, %s288_s18, [#allocation6]  }
   0x6   :  { %s33_s20 = sshll.u32 %s289_s19, 4  ;;  %s34_s20 = int_to_ptr.vmem [resolvable:$true] %s33_s20 }
   0x7   :  { %36 = dma.hbm_to_vmem [thread:$0]  %s32_s17, 256, %s34_s20, [#allocation4]  }
   0x8   :  { %280 = dma.done.wait [#allocation6], 16  }
   0x9   :  { %281 = vsyncadd [#allocation6], 4294967280 }
   0xa   :  { %282 = dma.done.wait [#allocation4], 256  }
   0xb   :  { %283 = vsyncadd [#allocation4], 4294967040 }
   0xc   :  { %45 = sfence }
   0xd   :  { %s50_s21 = sld [smem:[#allocation3]]  ;;  %v48_v0 = vld [vmem:[#allocation7] sm:$0xff]  ;;  %v49_v1 = vld [vmem:[#allocation7 + $0x8] sm:$0xff]  ;;  %s290_s1 = smov [#allocation8]   ;;  %vm102_vm2 = vcmask 1043456  }
   0xe   :  { %s173_s0 = sld [smem:[#allocation3 + $0x1]]  ;;  %s144_s22 = sshll.u32 %s290_s1, 4  ;;  %s145_s22 = int_to_ptr.vmem [resolvable:$true] %s144_s22 }
   0xf   :  { %s146_s25 = sshll.u32 %s326_s2, 4  ;;  %s291_s2 = smov [#allocation9]   ;;  %s147_s25 = int_to_ptr.hbm [resolvable:$true] %s146_s25 }
  0x10   :  { %s155_s26 = sshll.u32 %s291_s2, 4  ;;  %s157_s29 = sshll.u32 %s327_s3, 4  ;;  %s156_s26 = int_to_ptr.vmem [resolvable:$true] %s155_s26  ;;  %s158_s29 = int_to_ptr.hbm [resolvable:$true] %s157_s29 }
  0x13   :  { %v52_v2 = vstv %s50_s21 }
  0x14   :  { %v53_v3 = vmul.f32 %v52_v2, %v48_v0  ;;  %v54_v4 = vmul.f32 %v52_v2, %v49_v1  ;;  %v61_v18 = vstv %s173_s0 }
  0x16   :  { %v178_v5 = vcvt.f32.s32 %v53_v3  ;;  %v176_v6 = vand.u32 2147483647, %v53_v3  ;;  %v186_v7 = vcvt.f32.s32 %v54_v4  ;;  %v181_v9 = vand.u32 2147483648, %v53_v3 }
  0x17   :  { %v184_v10 = vand.u32 2147483647, %v54_v4  ;;  %v189_v12 = vand.u32 2147483648, %v54_v4 }
  0x18   :  { %v179_v8 = vcvt.s32.f32 %v178_v5  ;;  %v187_v11 = vcvt.s32.f32 %v186_v7  ;;  %vm177_vm0 = vcmp.lt.f32.partialorder %v176_v6, 8388608.0 }
  0x19   :  { %vm185_vm1 = vcmp.lt.f32.partialorder %v184_v10, 8388608.0 }
  0x1a   :  { %v180_v13 = vand.u32 2147483647, %v179_v8  ;;  %v188_v14 = vand.u32 2147483647, %v187_v11 }
  0x1c   :  { %v182_v15 = vor.u32 %v181_v9, %v180_v13  ;;  %v190_v16 = vor.u32 %v189_v12, %v188_v14 }
  0x1e   :  { %v183_v17 = vsel %vm177_vm0, %v182_v15, %v53_v3  ;;  %v191_v20 = vsel %vm185_vm1, %v190_v16, %v54_v4 }
  0x1f   :  { %v174_v19 = vclamps-f32 %v183_v17, 256.0  ;;  %v175_v21 = vclamps-f32 %v191_v20, 256.0 }
  0x21   :  { %v62_v22 = vmul.f32 %v174_v19, %v61_v18  ;;  %v63_v23 = vmul.f32 %v175_v21, %v61_v18 }
  0x23   :  { %v66_v24 = vand.u32 2147483647, %v62_v22  ;;  %64 = vst [vmem:[#allocation8] sm:$0xff] %v62_v22  ;;  %v67_v25 = vand.u32 2147483647, %v63_v23 }
  0x24   :  { %65 = vst [vmem:[#allocation8 + $0x8] sm:$0xff] %v63_v23 }
  0x25   :  { %91 = vst [vmem:[#allocation1] ss:$2 sm:$0xff] %v66_v24  ;;  %149 = dma.vmem_to_hbm [thread:$0]  %s145_s22, 256, %s147_s25, [#allocation5]  }
  0x26   :  { %93 = vst [vmem:[#allocation1 + $0x10] ss:$2 sm:$0xff] %v67_v25 }
  0x2c   :  { %v94_v26 = vld.sshfl [vmem:[#allocation1] sm:$0xff pattern:$0x75316420]  ;;  %v95_v27 = vld.sshfl [vmem:[#allocation1 + $0x8] sm:$0xff pattern:$0x75316420] }
  0x2d   :  { %v103_v28 = vsel %vm102_vm2, %v94_v26, -inf  ;;  %v110_v29 = vsel %vm102_vm2, %v95_v27, -inf  ;;  %v96_v30 = vld.sshfl [vmem:[#allocation1 + $0x10] sm:$0xff pattern:$0x75316420] }
  0x2e   :  { %v104_v31 = vrot.slane %v103_v28, 4  ;;  %v111_v32 = vrot.slane %v110_v29, 4  ;;  %v117_v33 = vsel %vm102_vm2, %v96_v30, -inf  ;;  %v97_v34 = vld.sshfl [vmem:[#allocation1 + $0x18] sm:$0xff pattern:$0x75316420] }
  0x2f   :  { %v118_v35 = vrot.slane %v117_v33, 4  ;;  %v124_v36 = vsel %vm102_vm2, %v97_v34, -inf }
  0x30   :  { %v105_v37 = vmax.f32 %v103_v28, %v104_v31  ;;  %v112_v38 = vmax.f32 %v110_v29, %v111_v32  ;;  %v125_v39 = vrot.slane %v124_v36, 4 }
  0x31   :  { %v119_v40 = vmax.f32 %v117_v33, %v118_v35 }
  0x32   :  { %v106_v41 = vrot.slane %v105_v37, 2  ;;  %v113_v42 = vrot.slane %v112_v38, 2  ;;  %v126_v43 = vmax.f32 %v124_v36, %v125_v39 }
  0x33   :  { %v120_v44 = vrot.slane %v119_v40, 2 }
  0x34   :  { %v107_v45 = vmax.f32 %v105_v37, %v106_v41  ;;  %v114_v46 = vmax.f32 %v112_v38, %v113_v42  ;;  %v127_v47 = vrot.slane %v126_v43, 2 }
  0x35   :  { %v121_v48 = vmax.f32 %v119_v40, %v120_v44 }
  0x36   :  { %v108_v49 = vrot.slane %v107_v45, 1  ;;  %v115_v50 = vrot.slane %v114_v46, 1  ;;  %v128_v51 = vmax.f32 %v126_v43, %v127_v47 }
  0x37   :  { %v122_v52 = vrot.slane %v121_v48, 1 }
  0x38   :  { %v109_v53 = vmax.f32 %v107_v45, %v108_v49  ;;  %v116_v54 = vmax.f32 %v114_v46, %v115_v50  ;;  %v129_v55 = vrot.slane %v128_v51, 1 }
  0x39   :  { %v123_v56 = vmax.f32 %v121_v48, %v122_v52 }
  0x3a   :  { %131 = vst [vmem:[#allocation9] sm:$0xff] %v109_v53  ;;  %v130_v57 = vmax.f32 %v128_v51, %v129_v55 }
  0x3b   :  { %132 = vst [vmem:[#allocation9 + $0x8] sm:$0xff] %v116_v54 }
  0x3c   :  { %133 = vst [vmem:[#allocation9 + $0x10] sm:$0xff] %v123_v56 }
  0x3d   :  { %134 = vst [vmem:[#allocation9 + $0x18] sm:$0xff] %v130_v57 }
  0x3e   :  { %160 = dma.vmem_to_hbm [thread:$0]  %s156_s26, 512, %s158_s29, [#allocation10]  }
  0x3f   :  { %284 = dma.done.wait [#allocation5], 256  }
  0x40   :  { %285 = vsyncadd [#allocation5], 4294967040 }
  0x41   :  { %286 = dma.done.wait [#allocation10], 512  }
  0x42   :  { %287 = vsyncadd [#allocation10], 4294966784 }
  0x43   :  { %169 = vsyncpa [#allocation4], 1 }
  0x44   :  { %170 = vsyncpa [#allocation5], 1 }
  0x45   :  { %171 = vsyncpa [#allocation10], 1 }
  0x46   :  { %172 = vsyncpa [#allocation6], 1 }

</bundles_post_ra>
